<compile_context>
chip_gen: v6e
topology: v6e:2x2x1
jax: 0.10.0
libtpu: 0.0.40
codegen_flags: <defaults>
</compile_context>

<pallas_src>
import functools
import math

import jax
import jax.numpy as jnp
from jax import lax
from jax.experimental import pallas as pl
from jax.experimental.pallas import tpu as pltpu


# ----------------------------------------------------------------------------
# Fused kernel: one (batch, H-tile) grid step does primary 1x1 conv + BN shift
# + ReLU, the depthwise 3x3 + BN shift + ReLU, and stores one lane-dense
# [x1 | x2] slab straight into the final output tile.
# ----------------------------------------------------------------------------
def _ghost_kernel(x_ref, w1_ref, b1_ref, wdw_ref, b2_ref, o_ref, *,
                  tile_h, H, W, Cp):
    """
    x_ref   : (1, H+2, (W+2)*Cin) bf16   zero-padded, lane-dense input
                                         (resident in VMEM per batch element)
    w1_ref  : ((W+2)*Cin, (W+2)*Cp) bf16 block-diagonal 1x1 weight (BN folded)
    b1_ref  : (1, (W+2)*Cp) f32          BN shift tiled per pixel, zeroed on
                                         the two padding columns
    wdw_ref : (9, W*Cp) f32              per-tap lane-dense depthwise weight
                                         (BN folded); row index = kh*3 + kw
    b2_ref  : (1, W*Cp) f32              BN shift of the cheap op, per pixel
    o_ref   : (1, tile_h, 2*W*Cp) bf16   lane-dense [x1 | x2] output slab
    """
    th = tile_h
    Wp = W + 2
    h = pl.program_id(1)
    row0 = h * th
    if th % 8 == 0:
        row0 = pl.multiple_of(row0, 8)           # aligned windowed read

    # ---- primary conv: one MXU matmul against the block-diagonal weight ----
    xw = x_ref[0, pl.ds(row0, th + 2), :]                     # (th+2, Wp*Cin)
    y = jnp.dot(xw, w1_ref[...], preferred_element_type=jnp.float32)
    x1 = jnp.maximum(y + b1_ref[...], 0.0)                    # (th+2, Wp*Cp)

    # Padding *columns* are already exactly zero (their b1 lanes are zeroed at
    # build time and their matmul contribution is 0).  Only the at-most-two
    # padding *rows* of this tile need zeroing so the depthwise sees true
    # zero padding (cheap (th+2,1) mask instead of a full-window iota mask).
    r = lax.broadcasted_iota(jnp.int32, (th + 2, 1), 0) + h * th
    x1 = jnp.where((r >= 1) & (r <= H), x1, 0.0)

    # ---- cheap operation: depthwise 3x3, f32 accumulation, x1 in vregs -----
    # TODO(synk): on v6e/v7x a bf16 x1 + bf16 VALU variant would halve the
    # tap bytes further; kept f32 here so the same kernel is exact on v5e.
    wdw = wdw_ref[...]                                        # (9, W*Cp)
    acc = jnp.zeros((th, W * Cp), jnp.float32)
    x1_int = None
    for kh in range(3):
        rows = x1[kh:kh + th, :]                              # (th, Wp*Cp)
        for kw in range(3):
            tap = rows[:, kw * Cp:(kw + W) * Cp]              # (th, W*Cp)
            if kh == 1 and kw == 1:
                x1_int = tap                                  # interior of x1
            acc = acc + tap * wdw[kh * 3 + kw, :]
    x2 = jnp.maximum(acc + b2_ref[...], 0.0)

    # ---- concat = two adjacent lane slabs; one full-width bf16 store -------
    out = jnp.concatenate([x1_int, x2], axis=-1)              # (th, 2*W*Cp)
    o_ref[0, :, :] = out.astype(o_ref.dtype)


def _pick_tile_h(H, W, Cp, work_budget_bytes=2 << 20):
    # Largest multiple-of-8 divisor of H whose f32 working slab stays small
    # (keeps x1 + taps in vregs); fall back to full H (a legal "full dim").
    cands = [t for t in range(H, 0, -1) if H % t == 0 and t % 8 == 0]
    for t in cands:
        if (t + 2) * (W + 2) * Cp * 4 * 12 <= work_budget_bytes:
            return t
    return cands[-1] if cands else H


def _vmem_limit_bytes(H, W, Cin, Cp, th):
    Wp = W + 2
    in_block = (H + 2) * Wp * Cin * 2                  # bf16 resident input
    out_block = th * 2 * W * Cp * 2                    # bf16 output tile
    weights = Wp * Cin * Wp * Cp * 2 + Wp * Cp * 4 + 9 * W * Cp * 4 + W * Cp * 4
    work = (th + 2) * Wp * max(Cin, Cp) * 4 * 12       # live f32 values
    est = 2 * in_block + 2 * out_block + weights + work
    # Generous 2x margin, capped well below every generation's physical VMEM
    # (v5e/v6e 128 MiB, v7x 64 MiB per TC).
    return int(min(32 << 20, max(2 << 20, 2 * est)))


# ----------------------------------------------------------------------------
# GhostModule forward (module defaults: kernel_size=1, ratio=2, dw_size=3,
# stride=1, relu=True).  Input/output are NCHW like the PyTorch module.
# ----------------------------------------------------------------------------
def ghost_module_forward(x_nchw, params, oup, tile_h=None):
    N, Cin, H, W = x_nchw.shape
    Cp = params["w1"].shape[1]                         # init_channels
    assert Cp <= oup <= 2 * Cp
    Wp = W + 2
    th = _pick_tile_h(H, W, Cp) if tile_h is None else tile_h
    assert H % th == 0 and (th % 8 == 0 or th == H)

    # TODO(synk): keep activations lane-dense/NHWC end-to-end in the host
    # model to drop the NCHW<->NHWC transposes around the kernel.
    x = jnp.transpose(x_nchw, (0, 2, 3, 1))                    # NCHW -> NHWC
    xpad = jnp.pad(x, ((0, 0), (1, 1), (1, 1), (0, 0))).astype(jnp.bfloat16)
    xflat = xpad.reshape(N, H + 2, Wp * Cin)                   # free reshape

    # Kernel-format (lane-dense) operands; BN scales already folded in params.
    w1 = params["w1"].astype(jnp.float32)                      # (Cin, Cp)
    eye = jnp.eye(Wp, dtype=jnp.float32)
    wbig = jnp.einsum("pq,io->piqo", eye, w1).reshape(Wp * Cin, Wp * Cp)
    wbig = wbig.astype(jnp.bfloat16)                           # block-diagonal
    colvalid = jnp.zeros((Wp,), jnp.float32).at[1:W + 1].set(1.0)
    b1d = (colvalid[:, None] * params["b1"][None, :]).reshape(1, Wp * Cp)
    wdwd = jnp.tile(params["wdw"].reshape(9, Cp), (1, W))      # (9, W*Cp)
    b2d = jnp.tile(params["b2"], (W,)).reshape(1, W * Cp)

    kernel = functools.partial(_ghost_kernel, tile_h=th, H=H, W=W, Cp=Cp)
    out_flat = pl.pallas_call(
        kernel,
        out_shape=jax.ShapeDtypeStruct((N, H, 2 * W * Cp), jnp.bfloat16),
        grid=(N, H // th),
        in_specs=[
            # Padded input: block index only depends on n -> resident in VMEM
            # across the H-tiles of one image.
            # TODO(synk): for large activations (or batch-1 on dual-TC v7x,
            # where both cores would re-DMA the whole image) switch to a
            # (th+2)-row input window per grid step instead.
            pl.BlockSpec((1, H + 2, Wp * Cin), lambda n, h: (n, 0, 0)),
            pl.BlockSpec((Wp * Cin, Wp * Cp), lambda n, h: (0, 0)),
            pl.BlockSpec((1, Wp * Cp), lambda n, h: (0, 0)),
            pl.BlockSpec((9, W * Cp), lambda n, h: (0, 0)),
            pl.BlockSpec((1, W * Cp), lambda n, h: (0, 0)),
        ],
        out_specs=pl.BlockSpec((1, th, 2 * W * Cp), lambda n, h: (n, h, 0)),
        compiler_params=pltpu.CompilerParams(
            dimension_semantics=("parallel", "parallel"),
            vmem_limit_bytes=_vmem_limit_bytes(H, W, Cin, Cp, th)),
    )(xflat, wbig, b1d, wdwd, b2d)

    # Wrapper-side layout plumbing only: channel interleave + [:oup] + NCHW.
    out = out_flat.reshape(N, H, 2, W, Cp)
    out = jnp.transpose(out, (0, 2, 4, 1, 3)).reshape(N, 2 * Cp, H, W)
    # TODO(synk): when oup < 2*Cp the kernel still computes the discarded x2
    # channels (waste, not wrong); trim wdw/b2 lanes at build time to skip it.
    return out[:, :oup].astype(jnp.float32)


# ----------------------------------------------------------------------------
# Deterministic parameters (shapes from GhostModule.__init__), BN folded.
# ----------------------------------------------------------------------------
def make_params(key, inp, oup, ratio=2, dw_size=3, eps=1e-5):
    init_ch = math.ceil(oup / ratio)
    new_ch = init_ch * (ratio - 1)
    if ratio != 2 or dw_size != 3:
        # TODO(synk): the fused kernel implements the module defaults only
        # (ratio=2 -> 1:1 depthwise group mapping, 3x3 cheap op).
        raise NotImplementedError("fused kernel supports ratio=2, dw_size=3")

    ks = jax.random.split(key, 10)
    # torch layouts: primary [init_ch, inp, 1, 1]; depthwise [new_ch, 1, 3, 3]
    w_primary_t = jax.random.normal(ks[0], (init_ch, inp, 1, 1), jnp.float32) * 0.3
    w_dw_t = jax.random.normal(ks[1], (new_ch, 1, dw_size, dw_size), jnp.float32) * 0.3

    def bn(kg, kb, km, kv, c):
        gamma = jax.random.uniform(kg, (c,), jnp.float32, 0.5, 1.5)
        beta = jax.random.normal(kb, (c,), jnp.float32) * 0.1
        mean = jax.random.normal(km, (c,), jnp.float32) * 0.1
        var = jax.random.uniform(kv, (c,), jnp.float32, 0.5, 1.5)
        scale = gamma / jnp.sqrt(var + eps)
        shift = beta - mean * scale
        return scale, shift

    scale1, shift1 = bn(ks[2], ks[3], ks[4], ks[5], init_ch)
    scale2, shift2 = bn(ks[6], ks[7], ks[8], ks[9], new_ch)

    # Fold the BN scales into the conv weights; the kernel only adds shifts.
    w1 = jnp.transpose(w_primary_t[:, :, 0, 0], (1, 0)) * scale1[None, :]
    wdw = jnp.transpose(w_dw_t[:, 0, :, :], (1, 2, 0)) * scale2[None, None, :]

    params = {
        "w1": w1.astype(jnp.bfloat16),   # (inp, init_ch)  bf16 MXU operand
        "b1": shift1,                    # (init_ch,)      f32
        "wdw": wdw,                      # (3, 3, new_ch)  f32
        "b2": shift2,                    # (new_ch,)       f32
    }
    return params, init_ch, new_ch


# ----------------------------------------------------------------------------
# Pure-JAX lax.conv reference (same folded weights, same bf16 rounding of the
# matmul operands as the kernel; depthwise kept in f32 like the kernel).
# ----------------------------------------------------------------------------
def reference_forward(x_nchw, params, oup):
    dn = ("NCHW", "OIHW", "NCHW")
    Cp = params["w1"].shape[1]
    xq = x_nchw.astype(jnp.bfloat16).astype(jnp.float32)
    w1 = jnp.transpose(params["w1"].astype(jnp.float32), (1, 0))[:, :, None, None]
    x1 = lax.conv_general_dilated(xq, w1, (1, 1), "VALID", dimension_numbers=dn,
                                  precision=lax.Precision.HIGHEST)
    x1 = jnp.maximum(x1 + params["b1"][None, :, None, None], 0.0)
    wdw = jnp.transpose(params["wdw"], (2, 0, 1))[:, None, :, :]   # [C,1,3,3]
    x2 = lax.conv_general_dilated(x1, wdw, (1, 1), ((1, 1), (1, 1)),
                                  dimension_numbers=dn, feature_group_count=Cp,
                                  precision=lax.Precision.HIGHEST)
    x2 = jnp.maximum(x2 + params["b2"][None, :, None, None], 0.0)
    return jnp.concatenate([x1, x2], axis=1)[:, :oup, :, :]


if __name__ == "__main__":
    # GhostModule(inp=4, oup=8) on a (2, 4, 16, 16) input.
    N, inp, H, W = 2, 4, 16, 16
    oup = 8

    key = jax.random.PRNGKey(0)
    k_x, k_p = jax.random.split(key)
    x = jax.random.normal(k_x, (N, inp, H, W), jnp.float32)
    params, init_ch, new_ch = make_params(k_p, inp, oup)

    fwd = jax.jit(ghost_module_forward, static_argnames=("oup", "tile_h"))
    ref = jax.block_until_ready(reference_forward(x, params, oup))

    # Default tiling (tile_h = 16 here -> single H tile per image).
    out = jax.block_until_ready(fwd(x, params, oup=oup))
    assert out.shape == (N, oup, H, W), out.shape
    err = float(jnp.max(jnp.abs(out - ref)))
    assert err < 5e-2, err          # bf16 output writeback -> ~1e-2 rounding

    # Forced 2-tile run to exercise the halo window / row-mask path as well.
    out2 = jax.block_until_ready(fwd(x, params, oup=oup, tile_h=8))
    err2 = float(jnp.max(jnp.abs(out2 - ref)))
    assert err2 < 5e-2, err2

    print("KERNEL_OK")
</pallas_src>

<mosaic_0001>
module attributes {stable_mosaic.version = 11 : i64} {
  func.func @_ghost_kernel(%arg0: i32, %arg1: i32, %arg2: memref<1x18x72xbf16, #tpu.memory_space<vmem>>, %arg3: memref<72x72xbf16, #tpu.memory_space<vmem>>, %arg4: memref<1x72xf32, #tpu.memory_space<vmem>>, %arg5: memref<9x64xf32, #tpu.memory_space<vmem>>, %arg6: memref<1x64xf32, #tpu.memory_space<vmem>>, %arg7: memref<1x16x128xbf16, #tpu.memory_space<vmem>>) attributes {dimension_semantics = [#tpu.dimension_semantics<parallel>, #tpu.dimension_semantics<parallel>], iteration_bounds = array<i64: 2, 1>, scalar_prefetch = 0 : i64, scratch_operands = 0 : i64, tpu.core_type = #tpu.core_type<tc>, window_params = [{transform_indices = @transform_0, window_bounds = array<i64: 1, 18, 72>}, {pipeline_mode = #tpu.pipeline_mode<synchronous>, transform_indices = @transform_1, window_bounds = array<i64: 72, 72>}, {pipeline_mode = #tpu.pipeline_mode<synchronous>, transform_indices = @transform_2, window_bounds = array<i64: 1, 72>}, {pipeline_mode = #tpu.pipeline_mode<synchronous>, transform_indices = @transform_3, window_bounds = array<i64: 9, 64>}, {pipeline_mode = #tpu.pipeline_mode<synchronous>, transform_indices = @transform_4, window_bounds = array<i64: 1, 64>}, {transform_indices = @transform_5, window_bounds = array<i64: 1, 16, 128>}]} {
    %c16_i32 = arith.constant 16 : i32
    %0 = arith.muli %arg1, %c16_i32 : i32
    %1 = tpu.assume_multiple %0, 8 : i32
    %c0 = arith.constant 0 : index
    %2 = arith.index_cast %1 : i32 to index
    %c0_0 = arith.constant 0 : index
    %3 = vector.load %arg2[%c0, %2, %c0_0] : memref<1x18x72xbf16, #tpu.memory_space<vmem>>, vector<1x18x72xbf16>
    %4 = vector.shape_cast %3 : vector<1x18x72xbf16> to vector<18x72xbf16>
    %c0_1 = arith.constant 0 : index
    %c0_2 = arith.constant 0 : index
    %5 = vector.load %arg3[%c0_1, %c0_2] : memref<72x72xbf16, #tpu.memory_space<vmem>>, vector<72x72xbf16>
    %cst = arith.constant dense<0.000000e+00> : vector<18x72xf32>
    %6 = tpu.matmul %4, %5, %cst {dimension_numbers = #tpu.dot_dimension_numbers<[1], [0], [0], [1], [0, 0, 1, 1], [], []>} : vector<18x72xbf16>, vector<72x72xbf16>, vector<18x72xf32> -> vector<18x72xf32>
    %c0_3 = arith.constant 0 : index
    %c0_4 = arith.constant 0 : index
    %7 = vector.load %arg4[%c0_3, %c0_4] : memref<1x72xf32, #tpu.memory_space<vmem>>, vector<1x72xf32>
    %8 = vector.broadcast %7 : vector<1x72xf32> to vector<18x72xf32>
    %9 = arith.addf %6, %8 : vector<18x72xf32>
    %cst_5 = arith.constant 0.000000e+00 : f32
    %10 = vector.broadcast %cst_5 : f32 to vector<18x72xf32>
    %11 = arith.maximumf %9, %10 : vector<18x72xf32>
    %12 = tpu.iota {dimensions = array<i32: 0>} : vector<18x1xi32>
    %c16_i32_6 = arith.constant 16 : i32
    %13 = arith.muli %arg1, %c16_i32_6 : i32
    %14 = vector.broadcast %13 : i32 to vector<18x1xi32>
    %15 = arith.addi %12, %14 : vector<18x1xi32>
    %c1_i32 = arith.constant 1 : i32
    %16 = vector.broadcast %c1_i32 : i32 to vector<18x1xi32>
    %17 = arith.cmpi sge, %15, %16 : vector<18x1xi32>
    %c16_i32_7 = arith.constant 16 : i32
    %18 = vector.broadcast %c16_i32_7 : i32 to vector<18x1xi32>
    %19 = arith.cmpi sle, %15, %18 : vector<18x1xi32>
    %20 = arith.andi %17, %19 : vector<18x1xi1>
    %cst_8 = arith.constant 0.000000e+00 : f32
    %21 = vector.shape_cast %20 : vector<18x1xi1> to vector<18x1xi1>
    %22 = vector.broadcast %21 : vector<18x1xi1> to vector<18x72xi1>
    %23 = vector.broadcast %cst_8 : f32 to vector<18x72xf32>
    %24 = arith.select %22, %11, %23 : vector<18x72xi1>, vector<18x72xf32>
    %c0_9 = arith.constant 0 : index
    %c0_10 = arith.constant 0 : index
    %25 = vector.load %arg5[%c0_9, %c0_10] : memref<9x64xf32, #tpu.memory_space<vmem>>, vector<9x64xf32>
    %cst_11 = arith.constant 0.000000e+00 : f32
    %26 = vector.broadcast %cst_11 : f32 to vector<16x64xf32>
    %27 = vector.extract_strided_slice %24 {offsets = [0, 0], sizes = [16, 72], strides = [1, 1]} : vector<18x72xf32> to vector<16x72xf32>
    %28 = vector.extract_strided_slice %27 {offsets = [0, 0], sizes = [16, 64], strides = [1, 1]} : vector<16x72xf32> to vector<16x64xf32>
    %29 = vector.extract_strided_slice %25 {offsets = [0, 0], sizes = [1, 64], strides = [1, 1]} : vector<9x64xf32> to vector<1x64xf32>
    %30 = vector.shape_cast %29 : vector<1x64xf32> to vector<64xf32>
    %31 = vector.shape_cast %30 : vector<64xf32> to vector<1x64xf32>
    %32 = vector.broadcast %31 : vector<1x64xf32> to vector<16x64xf32>
    %33 = arith.mulf %28, %32 : vector<16x64xf32>
    %34 = arith.addf %26, %33 : vector<16x64xf32>
    %35 = vector.extract_strided_slice %27 {offsets = [0, 4], sizes = [16, 64], strides = [1, 1]} : vector<16x72xf32> to vector<16x64xf32>
    %36 = vector.extract_strided_slice %25 {offsets = [1, 0], sizes = [1, 64], strides = [1, 1]} : vector<9x64xf32> to vector<1x64xf32>
    %37 = vector.shape_cast %36 : vector<1x64xf32> to vector<64xf32>
    %38 = vector.shape_cast %37 : vector<64xf32> to vector<1x64xf32>
    %39 = vector.broadcast %38 : vector<1x64xf32> to vector<16x64xf32>
    %40 = arith.mulf %35, %39 : vector<16x64xf32>
    %41 = arith.addf %34, %40 : vector<16x64xf32>
    %42 = vector.extract_strided_slice %27 {offsets = [0, 8], sizes = [16, 64], strides = [1, 1]} : vector<16x72xf32> to vector<16x64xf32>
    %43 = vector.extract_strided_slice %25 {offsets = [2, 0], sizes = [1, 64], strides = [1, 1]} : vector<9x64xf32> to vector<1x64xf32>
    %44 = vector.shape_cast %43 : vector<1x64xf32> to vector<64xf32>
    %45 = vector.shape_cast %44 : vector<64xf32> to vector<1x64xf32>
    %46 = vector.broadcast %45 : vector<1x64xf32> to vector<16x64xf32>
    %47 = arith.mulf %42, %46 : vector<16x64xf32>
    %48 = arith.addf %41, %47 : vector<16x64xf32>
    %49 = vector.extract_strided_slice %24 {offsets = [1, 0], sizes = [16, 72], strides = [1, 1]} : vector<18x72xf32> to vector<16x72xf32>
    %50 = vector.extract_strided_slice %49 {offsets = [0, 0], sizes = [16, 64], strides = [1, 1]} : vector<16x72xf32> to vector<16x64xf32>
    %51 = vector.extract_strided_slice %25 {offsets = [3, 0], sizes = [1, 64], strides = [1, 1]} : vector<9x64xf32> to vector<1x64xf32>
    %52 = vector.shape_cast %51 : vector<1x64xf32> to vector<64xf32>
    %53 = vector.shape_cast %52 : vector<64xf32> to vector<1x64xf32>
    %54 = vector.broadcast %53 : vector<1x64xf32> to vector<16x64xf32>
    %55 = arith.mulf %50, %54 : vector<16x64xf32>
    %56 = arith.addf %48, %55 : vector<16x64xf32>
    %57 = vector.extract_strided_slice %49 {offsets = [0, 4], sizes = [16, 64], strides = [1, 1]} : vector<16x72xf32> to vector<16x64xf32>
    %58 = vector.extract_strided_slice %25 {offsets = [4, 0], sizes = [1, 64], strides = [1, 1]} : vector<9x64xf32> to vector<1x64xf32>
    %59 = vector.shape_cast %58 : vector<1x64xf32> to vector<64xf32>
    %60 = vector.shape_cast %59 : vector<64xf32> to vector<1x64xf32>
    %61 = vector.broadcast %60 : vector<1x64xf32> to vector<16x64xf32>
    %62 = arith.mulf %57, %61 : vector<16x64xf32>
    %63 = arith.addf %56, %62 : vector<16x64xf32>
    %64 = vector.extract_strided_slice %49 {offsets = [0, 8], sizes = [16, 64], strides = [1, 1]} : vector<16x72xf32> to vector<16x64xf32>
    %65 = vector.extract_strided_slice %25 {offsets = [5, 0], sizes = [1, 64], strides = [1, 1]} : vector<9x64xf32> to vector<1x64xf32>
    %66 = vector.shape_cast %65 : vector<1x64xf32> to vector<64xf32>
    %67 = vector.shape_cast %66 : vector<64xf32> to vector<1x64xf32>
    %68 = vector.broadcast %67 : vector<1x64xf32> to vector<16x64xf32>
    %69 = arith.mulf %64, %68 : vector<16x64xf32>
    %70 = arith.addf %63, %69 : vector<16x64xf32>
    %71 = vector.extract_strided_slice %24 {offsets = [2, 0], sizes = [16, 72], strides = [1, 1]} : vector<18x72xf32> to vector<16x72xf32>
    %72 = vector.extract_strided_slice %71 {offsets = [0, 0], sizes = [16, 64], strides = [1, 1]} : vector<16x72xf32> to vector<16x64xf32>
    %73 = vector.extract_strided_slice %25 {offsets = [6, 0], sizes = [1, 64], strides = [1, 1]} : vector<9x64xf32> to vector<1x64xf32>
    %74 = vector.shape_cast %73 : vector<1x64xf32> to vector<64xf32>
    %75 = vector.shape_cast %74 : vector<64xf32> to vector<1x64xf32>
    %76 = vector.broadcast %75 : vector<1x64xf32> to vector<16x64xf32>
    %77 = arith.mulf %72, %76 : vector<16x64xf32>
    %78 = arith.addf %70, %77 : vector<16x64xf32>
    %79 = vector.extract_strided_slice %71 {offsets = [0, 4], sizes = [16, 64], strides = [1, 1]} : vector<16x72xf32> to vector<16x64xf32>
    %80 = vector.extract_strided_slice %25 {offsets = [7, 0], sizes = [1, 64], strides = [1, 1]} : vector<9x64xf32> to vector<1x64xf32>
    %81 = vector.shape_cast %80 : vector<1x64xf32> to vector<64xf32>
    %82 = vector.shape_cast %81 : vector<64xf32> to vector<1x64xf32>
    %83 = vector.broadcast %82 : vector<1x64xf32> to vector<16x64xf32>
    %84 = arith.mulf %79, %83 : vector<16x64xf32>
    %85 = arith.addf %78, %84 : vector<16x64xf32>
    %86 = vector.extract_strided_slice %71 {offsets = [0, 8], sizes = [16, 64], strides = [1, 1]} : vector<16x72xf32> to vector<16x64xf32>
    %87 = vector.extract_strided_slice %25 {offsets = [8, 0], sizes = [1, 64], strides = [1, 1]} : vector<9x64xf32> to vector<1x64xf32>
    %88 = vector.shape_cast %87 : vector<1x64xf32> to vector<64xf32>
    %89 = vector.shape_cast %88 : vector<64xf32> to vector<1x64xf32>
    %90 = vector.broadcast %89 : vector<1x64xf32> to vector<16x64xf32>
    %91 = arith.mulf %86, %90 : vector<16x64xf32>
    %92 = arith.addf %85, %91 : vector<16x64xf32>
    %c0_12 = arith.constant 0 : index
    %c0_13 = arith.constant 0 : index
    %93 = vector.load %arg6[%c0_12, %c0_13] : memref<1x64xf32, #tpu.memory_space<vmem>>, vector<1x64xf32>
    %94 = vector.broadcast %93 : vector<1x64xf32> to vector<16x64xf32>
    %95 = arith.addf %92, %94 : vector<16x64xf32>
    %cst_14 = arith.constant 0.000000e+00 : f32
    %96 = vector.broadcast %cst_14 : f32 to vector<16x64xf32>
    %97 = arith.maximumf %95, %96 : vector<16x64xf32>
    %98 = tpu.concatenate %57, %97 in 1 : vector<16x64xf32>, vector<16x64xf32> -> vector<16x128xf32>
    %99 = arith.truncf %98 : vector<16x128xf32> to vector<16x128xbf16>
    %c0_15 = arith.constant 0 : index
    %c0_16 = arith.constant 0 : index
    %c0_17 = arith.constant 0 : index
    %100 = vector.load %arg7[%c0_15, %c0_16, %c0_17] : memref<1x16x128xbf16, #tpu.memory_space<vmem>>, vector<1x16x128xbf16>
    %101 = vector.shape_cast %100 : vector<1x16x128xbf16> to vector<16x128xbf16>
    %102 = vector.shape_cast %99 : vector<16x128xbf16> to vector<1x16x128xbf16>
    tpu.vector_store %arg7[%c0_15, %c0_16, %c0_17], %102 {strides = array<i32>} : memref<1x16x128xbf16, #tpu.memory_space<vmem>>, vector<1x16x128xbf16>,
    return
  }
  func.func @transform_0(%arg0: i32, %arg1: i32) -> (i32, i32, i32) {
    %c0_i32 = arith.constant 0 : i32
    %c0_i32_0 = arith.constant 0 : i32
    %c0_i32_1 = arith.constant 0 : i32
    return %arg0, %c0_i32, %c0_i32_0 : i32, i32, i32
  }
  func.func @transform_1(%arg0: i32, %arg1: i32) -> (i32, i32) {
    %c0_i32 = arith.constant 0 : i32
    %c0_i32_0 = arith.constant 0 : i32
    %c0_i32_1 = arith.constant 0 : i32
    return %c0_i32, %c0_i32_0 : i32, i32
  }
  func.func @transform_2(%arg0: i32, %arg1: i32) -> (i32, i32) {
    %c0_i32 = arith.constant 0 : i32
    %c0_i32_0 = arith.constant 0 : i32
    %c0_i32_1 = arith.constant 0 : i32
    return %c0_i32, %c0_i32_0 : i32, i32
  }
  func.func @transform_3(%arg0: i32, %arg1: i32) -> (i32, i32) {
    %c0_i32 = arith.constant 0 : i32
    %c0_i32_0 = arith.constant 0 : i32
    %c0_i32_1 = arith.constant 0 : i32
    return %c0_i32, %c0_i32_0 : i32, i32
  }
  func.func @transform_4(%arg0: i32, %arg1: i32) -> (i32, i32) {
    %c0_i32 = arith.constant 0 : i32
    %c0_i32_0 = arith.constant 0 : i32
    %c0_i32_1 = arith.constant 0 : i32
    return %c0_i32, %c0_i32_0 : i32, i32
  }
  func.func @transform_5(%arg0: i32, %arg1: i32) -> (i32, i32, i32) {
    %c0_i32 = arith.constant 0 : i32
    %c0_i32_0 = arith.constant 0 : i32
    return %arg0, %arg1, %c0_i32 : i32, i32, i32
  }
}

</mosaic_0001>

<bundles_post_ra>
// kernel: tile.16
= control target key start
LH: loop header
LB: loop body
LE: loop exit
PB: predicated region body
PF: predicated region fallthrough
CT: control target
= control target key end

     0   :  { %s28_s0 = inlined_call_operand.vmem [shape: f32[4], index: 0, kind: input, shape index: {}]   ;;  %s29_s1 = inlined_call_operand.vmem [shape: f32[16,4], index: 1, kind: output, shape index: {}]  }
   0x1   :  { %v4_v0 = vld [vmem:[%s28_s0] ss:$0 sm:$0xff] }
   0x2   :  { %5 = vst [vmem:[%s29_s1] sm:$0xff] %v4_v0  ;;  %8 = vst [vmem:[%s29_s1 + $0x8] sm:$0xff] %v4_v0 }

// kernel: tile.17
= control target key start
LH: loop header
LB: loop body
LE: loop exit
PB: predicated region body
PF: predicated region fallthrough
CT: control target
= control target key end

     0   :  { %s133_s10 = smov 60   ;;  %s134_s11 = smov 52   ;;  %vm3_vm0 = vcmask 31744   ;;  %vm9_vm1 = vcmask 523744   ;;  %vm15_vm2 = vcmask 490944   ;;  %vm21_vm3 = vcmask 458144   ;;  %s209_s0 = inlined_call_operand.vmem [shape: f32[16,4], index: 0, kind: input, shape index: {}]   ;;  %s210_s1 = inlined_call_operand.vmem [shape: f32[1,64], index: 1, kind: output, shape index: {}]  }
   0x1   :  { %v103_v0 = vld [vmem:[%s209_s0 + $0xf] sm:$0x1]   ;;  %v105_v1 = vld [vmem:[%s209_s0 + $0xd] sm:$0x1]   ;;  %v104_v2 = vld [vmem:[%s209_s0 + $0xe] sm:$0x1]  }
   0x2   :  { %7 = vrot.lane.b32.xlu0 %v103_v0, %s133_s10  ;;  %19 = vrot.lane.b32.xlu1 %v105_v1, %s134_s11  ;;  %v106_v3 = vld [vmem:[%s209_s0 + $0xc] sm:$0x1]   ;;  %s135_s16 = smov 56   ;;  %s136_s17 = smov 48   ;;  %v107_v4 = vld [vmem:[%s209_s0 + $0xb] sm:$0x1]  }
   0x3   :  { %v108_v5 = vld [vmem:[%s209_s0 + $0xa] sm:$0x1]   ;;  %v2_v6 = vld [vmem:[%s209_s0] sm:$0x1]   ;;  %s137_s24 = smov 44   ;;  %s138_s25 = smov 40  }
   0x4   :  { %4 = vst.msk [vmem:[#allocation0] sm:$0x1] %vm3_vm0, %v2_v6   ;;  %v109_v7 = vld [vmem:[%s209_s0 + $0x9] sm:$0x1]   ;;  %v110_v8 = vld [vmem:[%s209_s0 + $0x8] sm:$0x1]  }
   0x5   :  { %s139_s30 = smov 36   ;;  %s140_s2 = smov 32   ;;  %v111_v9 = vld [vmem:[%s209_s0 + $0x7] sm:$0x1]   ;;  %v112_v10 = vld [vmem:[%s209_s0 + $0x6] sm:$0x1]  }
   0x6   :  { %13 = vrot.lane.b32.xlu0 %v104_v2, %s135_s16  ;;  %25 = vrot.lane.b32.xlu1 %v106_v3, %s136_s17  ;;  %s141_s7 = smov 28   ;;  %s142_s8 = smov 24   ;;  %v113_v11 = vld [vmem:[%s209_s0 + $0x5] sm:$0x1]   ;;  %v114_v12 = vld [vmem:[%s209_s0 + $0x4] sm:$0x1]  }
   0x7   :  { %s143_s13 = smov 20   ;;  %s144_s14 = smov 16   ;;  %v115_v13 = vld [vmem:[%s209_s0 + $0x3] sm:$0x1]   ;;  %v116_v14 = vld [vmem:[%s209_s0 + $0x2] sm:$0x1]  }
   0x8   :  { %s145_s19 = smov 12   ;;  %s146_s20 = smov 8   ;;  %v117_v15 = vld [vmem:[%s209_s0 + $0x1] sm:$0x1]   ;;  %vm27_vm4 = vcmask 425344   ;;  %vm33_vm5 = vcmask 392544  }
   0x9   :  { %s147_s0 = smov 4   ;;  %vm39_vm6 = vcmask 359744   ;;  %vm45_vm7 = vcmask 326944   ;;  %vm51_vm8 = vcmask 294144   ;;  %vm57_vm9 = vcmask 261344  }
   0xa   :  { %31 = vrot.lane.b32.xlu0 %v107_v4, %s137_s24  ;;  %37 = vrot.lane.b32.xlu1 %v108_v5, %s138_s25  ;;  %vm63_vm10 = vcmask 228544   ;;  %vm69_vm11 = vcmask 195744   ;;  %vm75_vm12 = vcmask 162944   ;;  %vm81_vm13 = vcmask 130144  }
   0xb   :  { %vm87_vm14 = vcmask 97344   ;;  %vm93_vm15 = vcmask 64544  }
   0xe   :  { %43 = vrot.lane.b32.xlu0 %v109_v7, %s139_s30  ;;  %49 = vrot.lane.b32.xlu1 %v110_v8, %s140_s2 }
  0x12   :  { %55 = vrot.lane.b32.xlu0 %v111_v9, %s141_s7  ;;  %61 = vrot.lane.b32.xlu1 %v112_v10, %s142_s8 }
  0x16   :  { %67 = vrot.lane.b32.xlu0 %v113_v11, %s143_s13  ;;  %73 = vrot.lane.b32.xlu1 %v114_v12, %s144_s14 }
  0x1a   :  { %79 = vrot.lane.b32.xlu0 %v115_v13, %s145_s19  ;;  %85 = vrot.lane.b32.xlu1 %v116_v14, %s146_s20 }
  0x1e   :  { %91 = vrot.lane.b32.xlu0 %v117_v15, %s147_s0 }
  0x74   :  { %v8_v16 = vpop.permute.xlu0 %7   ;;  %v20_v17 = vpop.permute.xlu1 %19  }
  0x75   :  { %10 = vst.msk [vmem:[#allocation0] sm:$0x1] %vm9_vm1, %v8_v16  }
  0x78   :  { %v14_v18 = vpop.permute.xlu0 %13   ;;  %v26_v19 = vpop.permute.xlu1 %25  }
  0x79   :  { %16 = vst.msk [vmem:[#allocation0] sm:$0x1] %vm15_vm2, %v14_v18  }
  0x7a   :  { %22 = vst.msk [vmem:[#allocation0] sm:$0x1] %vm21_vm3, %v20_v17  }
  0x7b   :  { %28 = vst.msk [vmem:[#allocation0] sm:$0x1] %vm27_vm4, %v26_v19  }
  0x7c   :  { %v32_v20 = vpop.permute.xlu0 %31   ;;  %v38_v21 = vpop.permute.xlu1 %37  }
  0x7d   :  { %34 = vst.msk [vmem:[#allocation0] sm:$0x1] %vm33_vm5, %v32_v20  }
  0x7e   :  { %40 = vst.msk [vmem:[#allocation0] sm:$0x1] %vm39_vm6, %v38_v21  }
  0x80   :  { %v44_v22 = vpop.permute.xlu0 %43   ;;  %v50_v23 = vpop.permute.xlu1 %49  }
  0x81   :  { %46 = vst.msk [vmem:[#allocation0] sm:$0x1] %vm45_vm7, %v44_v22  }
  0x82   :  { %52 = vst.msk [vmem:[#allocation0] sm:$0x1] %vm51_vm8, %v50_v23  }
  0x84   :  { %v56_v24 = vpop.permute.xlu0 %55   ;;  %v62_v25 = vpop.permute.xlu1 %61  }
  0x85   :  { %58 = vst.msk [vmem:[#allocation0] sm:$0x1] %vm57_vm9, %v56_v24  }
  0x86   :  { %64 = vst.msk [vmem:[#allocation0] sm:$0x1] %vm63_vm10, %v62_v25  }
  0x88   :  { %v68_v26 = vpop.permute.xlu0 %67   ;;  %v74_v27 = vpop.permute.xlu1 %73  }
  0x89   :  { %70 = vst.msk [vmem:[#allocation0] sm:$0x1] %vm69_vm11, %v68_v26  }
  0x8a   :  { %76 = vst.msk [vmem:[#allocation0] sm:$0x1] %vm75_vm12, %v74_v27  }
  0x8c   :  { %v80_v28 = vpop.permute.xlu0 %79   ;;  %v86_v29 = vpop.permute.xlu1 %85  }
  0x8d   :  { %82 = vst.msk [vmem:[#allocation0] sm:$0x1] %vm81_vm13, %v80_v28  }
  0x8e   :  { %88 = vst.msk [vmem:[#allocation0] sm:$0x1] %vm87_vm14, %v86_v29  }
  0x90   :  { %v92_v30 = vpop.permute.xlu0 %91  }
  0x91   :  { %94 = vst.msk [vmem:[#allocation0] sm:$0x1] %vm93_vm15, %v92_v30  }
  0x98   :  { %v99_v31 = vld [vmem:[#allocation0] sm:$0x1] }
  0x99   :  { %102 = vst [vmem:[%s210_s1] sm:$0x1] %v99_v31 }

// kernel: ghost_module_forward.1
= control target key start
LH: loop header
LB: loop body
LE: loop exit
PB: predicated region body
PF: predicated region fallthrough
CT: control target
= control target key end

     0   :  { %s917_s18 = smov 0   ;;  %s919_s19 = smov 0   ;;  %s1064_s0 = inlined_call_operand.vmem [shape: bf16[2,18,72], index: 0, kind: input, shape index: {}]   ;;  %s1065_s1 = inlined_call_operand.vmem [shape: bf16[72,72], index: 1, kind: input, shape index: {}]   ;;  %s1066_s2 = inlined_call_operand.vmem [shape: f32[1,72], index: 2, kind: input, shape index: {}]   ;;  %s1067_s3 = inlined_call_operand.vmem [shape: f32[9,64], index: 3, kind: input, shape index: {}]   ;;  %s1068_s4 = inlined_call_operand.vmem [shape: f32[1,64], index: 4, kind: input, shape index: {}]   ;;  %s1069_s5 = inlined_call_operand.vmem [shape: bf16[2,16,128], index: 5, kind: output, shape index: {}]  }
   0x1   :  { %s921_s20 = smov 0  }
   0x2 LB: > { %s27_s21 = sadd.s32 1, %s876_s19  ;;  %p764_p0 = scmp.ge.s32.totalorder %s880_s20, 1  ;;  %s880_s20 = sphi %s921_s20, %s15_s20   ;;  %s876_s19 = sphi %s919_s19, %s1071_s19   ;;  %s872_s18 = sphi %s917_s18, %s1070_s18  }
   0x3   : > { %p29_p1 = scmp.ge.s32.totalorder %s27_s21, 2  ;;  %p201_p2 = scmp.lt.s32.totalorder %s880_s20, 3 }
   0x5   : > { %s1073_s21 = smov (%p29_p1, %s27_s21), 0  ;;  %p202_p3 = pnand %p764_p0, %p201_p2 }
   0x6   : > { %p233_p4 = scmp.lt.s32.totalorder (!%p202_p3), %s872_s18, 1  ;;  %s882_s11 = smov (!%p202_p3), 4  }
   0x7   : > { %205 = sbr.rel (%p202_p3) target bundleno = 515 (0x203), region = 40  ;;  %s883_s14 = smov (!%p202_p3), 8  }
   0x8   : > { %s884_s23 = smov (!%p202_p3), 124   ;;  %s885_s24 = smov (!%p202_p3), 120  }
   0x9   : > { %s886_s27 = smov (!%p202_p3), 64  }
   0xc   : > { %v851_v0 = vld [vmem:[%s1065_s1 + $0x20] ss:$0 sps:$4 sm:$0xff]   ;;  %vm315_vm0 = vcmask 1043456   ;;  %v852_v1 = vld [vmem:[%s1065_s1 + $0x18] sm:$0xff]   ;;  %v370_v2 = vlaneseq  ;;  %v853_v4 = vld [vmem:[%s1065_s1 + $0x10] sm:$0xff]   ;;  %s1075_s18 = smov (!%p233_p4, %s872_s18), 1 }
   0xd   : > { %810 = vmatprep.subr.msk.bf16.mxu0 %vm315_vm0, %v851_v0  ;;  %v317_v3 = vsel %vm315_vm0, %v851_v0, 0  ;;  %v951_v6 = vld [vmem:[%s1067_s3] sm:$0xff]  ;;  %s811_s30 = smul.u32 12, %s1075_s18  ;;  %v854_v11 = vld [vmem:[%s1065_s1 + $0x8] sm:$0xff]   ;;  %vm308_vm1 = vcmask 588800   ;;  %vm456_vm4 = vcmask 1046528  }
   0xe   : > { %797 = vmatpush3.bf16.msra.mxu0 %v317_v3  ;;  %v944_v5 = vshrl.u32 %v370_v2, 7  ;;  %v855_v18 = vld [vmem:[%s1065_s1] sm:$0xff]   ;;  %v778_v19 = vld [vmem:[%s1067_s3 + $0x8] ss:$0 sm:$0xff]  ;;  %vm530_vm5 = vcmask 1045504   ;;  %vm619_vm6 = vcmask 1040384  }
   0xf   : > { %798 = vmatprep.subr.bf16.mxu0 %v852_v1  ;;  %s237_s10 = scalar_lea.vmem %s1064_s0, %s811_s30  ;;  %v768_v22 = vld [vmem:[%s1066_s2] ss:$0 sm:$0xff]  ;;  %vm632_vm7 = vcmask 523264   ;;  %vm646_vm8 = vsmask.f32 3328  ;;  %s785_s28 = sshll.u32 %s1075_s18, 3 }
  0x10   : > { %v468_v7 = vsub.s32 4, %v944_v5  ;;  %v408_v8 = vsub.s32 1, %v944_v5  ;;  %v495_v9 = vsub.s32 5, %v944_v5  ;;  %v428_v10 = vsub.s32 2, %v944_v5  ;;  %v856_v15 = vld [vmem:[%s237_s10] sm:$0xff]   ;;  %s246_s6 = scalar_lea.vmem %s1069_s5, %s785_s28 }
  0x11   : > { %v542_v17 = vsub.s32 7, %v944_v5  ;;  %806 = vmatprep.mubr.msk.bf16.mxu0 %vm308_vm1, %v856_v15  ;;  %v857_v21 = vld [vmem:[%s237_s10 + $0x8] ss:$0 sps:$4 sm:$0x11]   ;;  %v373_v25 = vadd.s32 16, %v944_v5  ;;  %vm378_vm2 = vcmp.ge.s32.totalorder %v944_v5, 1 }
  0x12   : > { %799 = vmatpush3.bf16.msra.mxu0 %v852_v1  ;;  %v469_v12 = vrot.slane %v951_v6, %v468_v7  ;;  %v409_v13 = vrot.slane %v951_v6, %v408_v8  ;;  %v496_v14 = vrot.slane %v951_v6, %v495_v9  ;;  %v429_v16 = vrot.slane %v951_v6, %v428_v10 }
  0x13   : > { %800 = vmatprep.subr.bf16.mxu0 %v853_v4  ;;  %v543_v20 = vrot.slane %v951_v6, %v542_v17  ;;  %vm383_vm3 = vcmp.le.s32.totalorder %v373_v25, 16  ;;  %v448_v34 = vsub.s32 3, %v944_v5  ;;  %v522_v37 = vsub.s32 6, %v944_v5 }
  0x14   : > { %471 = vrot.lane.b32.xlu1 %v469_v12, %s882_s11  ;;  %411 = vrot.lane.b32.xlu0 %v409_v13, %s882_s11  ;;  %vm647_vm9 = vsmask.f32 7440 }
  0x15   : > { %v449_v42 = vrot.slane %v951_v6, %v448_v34  ;;  %v523_v48 = vrot.slane %v951_v6, %v522_v37  ;;  %vm648_vm10 = vmor %vm646_vm8, %vm647_vm9 }
  0x16   : > { %801 = vmatpush3.bf16.msra.mxu0 %v853_v4 }
  0x17   : > { %802 = vmatprep.subr.bf16.mxu0 %v854_v11 }
  0x18   : > { %498 = vrot.lane.b32.xlu1 %v496_v14, %s883_s14  ;;  %431 = vrot.lane.b32.xlu0 %v429_v16, %s883_s14 }
  0x1a   : > { %803 = vmatpush3.bf16.msra.mxu0 %v854_v11 }
  0x1b   : > { %804 = vmatprep.subr.bf16.mxu0 %v855_v18 }
  0x1c   : > { %572 = vrot.lane.b32.xlu1 %v778_v19, %s883_s14  ;;  %545 = vrot.lane.b32.xlu0 %v543_v20, %s882_s11 }
  0x1e   : > { %805 = vmatpush3.bf16.msra.mxu0 %v855_v18 }
  0x21   : > { %807 = vmatmul.mubr.msk.bf16.vlgmr.msra.gmra.mxu0 %vm308_vm1, %v857_v21 }
  0x86   : > { %v412_v28 = vpop.permute.xlu0 %411  ;;  %v472_v32 = vpop.permute.xlu1 %471 }
  0x8a   : > { %v432_v41 = vpop.permute.xlu0 %431  ;;  %v499_v45 = vpop.permute.xlu1 %498 }
  0x8e   : > { %v546_v58 = vpop.permute.xlu0 %545  ;;  %v573_v12 = vpop.permute.xlu1 %572 }
  0xe1   : > { %v808_v23 = vpop.f32.mrf.mxu0 }
  0xe2   : > { %v362_v24 = vadd.f32 %v808_v23, %v768_v22 }
  0xe3   : > { %v353_v26 = vpop.f32.mrf.mxu0 }
  0xe4   : > { %v354_v27 = vadd.f32 %v768_v22, %v353_v26  ;;  %v369_v30 = vmax.f32 %v362_v24, 0.0 }
  0xe5   : > { %v809_v29 = vpop.f32.mrf.mxu0 }
  0xe6   : > { %v367_v31 = vmax.f32 %v354_v27, 0.0  ;;  %v987_v38 = vsel %vm383_vm3, %v369_v30, 0.0 }
  0xe7   : > { %v356_v33 = vpop.f32.mrf.mxu0  ;;  %v476_v47 = vmul.f32 %v472_v32, %v987_v38  ;;  %v452_v52 = vmul.f32 %v449_v42, %v987_v38  ;;  %v503_v57 = vmul.f32 %v499_v45, %v987_v38  ;;  %v526_v61 = vmul.f32 %v523_v48, %v987_v38 }
  0xe8   : > { %v984_v35 = vsel %vm378_vm2, %v367_v31, 0.0  ;;  %v357_v36 = vadd.f32 %v768_v22, %v356_v33  ;;  %v550_v18 = vmul.f32 %v546_v58, %v987_v38  ;;  %v577_v27 = vmul.f32 %v573_v12, %v987_v38 }
  0xe9   : > { %v414_v40 = vmul.f32 %v412_v28, %v984_v35  ;;  %v474_v46 = vmul.f32 %v472_v32, %v984_v35  ;;  %v434_v49 = vmul.f32 %v432_v41, %v984_v35  ;;  %v501_v54 = vmul.f32 %v499_v45, %v984_v35 }
  0xea   : > { %v989_v39 = vmax.f32 %v357_v36, 0.0  ;;  %v450_v55 = vmul.f32 %v449_v42, %v984_v35  ;;  %v483_v60 = vrot.slane %v476_v47, 1  ;;  %v460_v3 = vrot.slane %v452_v52, 1 }
  0xeb   : > { %418 = vrot.lane.b32.xlu0 %v414_v40, %s884_s23  ;;  %v480_v59 = vrot.slane %v474_v46, 1  ;;  %v524_v4 = vmul.f32 %v523_v48, %v984_v35  ;;  %v548_v8 = vmul.f32 %v546_v58, %v984_v35  ;;  %v507_v10 = vrot.slane %v501_v54, 1 }
  0xec   : > { %v415_v43 = vmul.f32 %v412_v28, %v989_v39  ;;  %v475_v44 = vmul.f32 %v472_v32, %v989_v39  ;;  %v502_v50 = vmul.f32 %v499_v45, %v989_v39  ;;  %v435_v53 = vmul.f32 %v432_v41, %v989_v39 }
  0xed   : > { %v451_v56 = vmul.f32 %v449_v42, %v989_v39  ;;  %v549_v63 = vmul.f32 %v546_v58, %v989_v39  ;;  %v457_v0 = vrot.slane %v450_v55, 1  ;;  %v525_v7 = vmul.f32 %v523_v48, %v989_v39 }
  0xee   : > { %420 = vrot.lane.b32.xlu1 %v415_v43, %s884_s23  ;;  %v481_v51 = vrot.slane %v475_v44, 1  ;;  %v508_v62 = vrot.slane %v502_v50, 1  ;;  %v531_v14 = vrot.slane %v524_v4, 2  ;;  %v534_v16 = vrot.slane %v526_v61, 2 }
  0xef   : > { %438 = vrot.lane.b32.xlu0 %v434_v49, %s885_s24  ;;  %v458_v1 = vrot.slane %v451_v56, 1  ;;  %v532_v15 = vrot.slane %v525_v7, 2  ;;  %v510_v17 = vrot.slane %v503_v57, 1  ;;  %v576_v19 = vmul.f32 %v573_v12, %v989_v39 }
  0xf0   : > { %v482_v2 = vsel %vm456_vm4, %v480_v59, %v481_v51  ;;  %v484_v9 = vsel %vm456_vm4, %v481_v51, %v483_v60  ;;  %v509_v20 = vsel %vm456_vm4, %v507_v10, %v508_v62  ;;  %v555_v21 = vrot.slane %v549_v63, 2 }
  0xf1   : > { %v459_v11 = vsel %vm456_vm4, %v457_v0, %v458_v1  ;;  %v461_v13 = vsel %vm456_vm4, %v458_v1, %v460_v3  ;;  %v533_v22 = vsel %vm530_vm5, %v531_v14, %v532_v15  ;;  %v535_v23 = vsel %vm530_vm5, %v532_v15, %v534_v16 }
  0xf2   : > { %440 = vrot.lane.b32.xlu1 %v435_v53, %s885_s24  ;;  %v575_v24 = vmul.f32 %v573_v12, %v984_v35  ;;  %v554_v25 = vrot.slane %v548_v8, 2  ;;  %v511_v26 = vsel %vm456_vm4, %v508_v62, %v510_v17  ;;  %v557_v28 = vrot.slane %v550_v18, 2  ;;  %v779_v62 = vld [vmem:[%s1068_s4] ss:$0 sm:$0xff] }
  0xf3   : > { %485 = vrot.lane.b32.xlu0 %v482_v2, %s884_s23  ;;  %v582_v30 = vrot.slane %v576_v19, 2  ;;  %v584_v33 = vrot.slane %v577_v27, 2  ;;  %v841_v37 = vpack.i.bf16 %v989_v39, %v984_v35  ;;  %v400_v40 = vsub.s32 0, %v944_v5 }
  0xf4   : > { %v556_v29 = vsel %vm530_vm5, %v554_v25, %v555_v21  ;;  %v581_v31 = vrot.slane %v575_v24, 2  ;;  %v558_v32 = vsel %vm530_vm5, %v555_v21, %v557_v28 }
  0xf5   : > { %v585_v36 = vsel %vm530_vm5, %v582_v30, %v584_v33  ;;  %v401_v41 = vrot.slane %v951_v6, %v400_v40 }
  0xf6   : > { %487 = vrot.lane.b32.xlu1 %v484_v9, %s884_s23  ;;  %v583_v34 = vsel %vm530_vm5, %v581_v31, %v582_v30 }
  0xf7   : > { %512 = vrot.lane.b32.xlu0 %v509_v20, %s885_s24  ;;  %v402_v43 = vmul.f32 %v401_v41, %v984_v35  ;;  %v403_v46 = vmul.f32 %v401_v41, %v989_v39 }
  0xfa   : > { %514 = vrot.lane.b32.xlu1 %v511_v26, %s885_s24 }
  0xfb   : > { %559 = vrot.lane.b32.xlu0 %v556_v29, %s884_s23 }
  0xfe   : > { %561 = vrot.lane.b32.xlu1 %v558_v32, %s884_s23 }
  0xff   : > { %586 = vrot.lane.b32.xlu0 %v583_v34, %s885_s24 }
 0x102   : > { %588 = vrot.lane.b32.xlu1 %v585_v36, %s885_s24 }
 0x103   : > { %842 = vrot.lane.b32.xlu0 %v841_v37, %s884_s23 }
 0x107   : > { %612 = vrot.lane.b32.xlu0 %v987_v38, %s884_s23 }
 0x15d   : > { %v419_v42 = vpop.permute.xlu0 %418 }
 0x15e   : > { %v424_v45 = vadd.f32 %v419_v42, %v402_v43 }
 0x160   : > { %v421_v44 = vpop.permute.xlu1 %420 }
 0x161   : > { %v439_v47 = vpop.permute.xlu0 %438  ;;  %v425_v48 = vadd.f32 %v421_v44, %v403_v46 }
 0x162   : > { %v444_v49 = vadd.f32 %v439_v47, %v424_v45 }
 0x164   : > { %v441_v50 = vpop.permute.xlu1 %440  ;;  %v464_v52 = vadd.f32 %v459_v11, %v444_v49 }
 0x165   : > { %v445_v51 = vadd.f32 %v441_v50, %v425_v48  ;;  %v486_v53 = vpop.permute.xlu0 %485 }
 0x166   : > { %v491_v55 = vadd.f32 %v486_v53, %v464_v52 }
 0x167   : > { %v465_v54 = vadd.f32 %v461_v13, %v445_v51 }
 0x168   : > { %v488_v38 = vpop.permute.xlu1 %487 }
 0x169   : > { %v513_v5 = vpop.permute.xlu0 %512  ;;  %v492_v56 = vadd.f32 %v488_v38, %v465_v54 }
 0x16a   : > { %v518_v6 = vadd.f32 %v513_v5, %v491_v55 }
 0x16c   : > { %v515_v57 = vpop.permute.xlu1 %514  ;;  %v538_v35 = vadd.f32 %v533_v22, %v518_v6 }
 0x16d   : > { %v519_v58 = vadd.f32 %v515_v57, %v492_v56  ;;  %v560_v59 = vpop.permute.xlu0 %559 }
 0x16e   : > { %v565_v39 = vadd.f32 %v560_v59, %v538_v35 }
 0x16f   : > { %v539_v60 = vadd.f32 %v535_v23, %v519_v58 }
 0x170   : > { %v562_v61 = vpop.permute.xlu1 %561 }
 0x171   : > { %v587_v63 = vpop.permute.xlu0 %586  ;;  %v566_v0 = vadd.f32 %v562_v61, %v539_v60 }
 0x172   : > { %v592_v1 = vadd.f32 %v587_v63, %v565_v39 }
 0x174   : > { %v589_v2 = vpop.permute.xlu1 %588  ;;  %v601_v3 = vadd.f32 %v779_v62, %v592_v1 }
 0x175   : > { %v593_v4 = vadd.f32 %v589_v2, %v566_v0  ;;  %v843_v14 = vpop.permute.xlu0 %842 }
 0x176   : > { %v603_v7 = vmax.f32 %v601_v3, 0.0  ;;  %v845_v16 = vunpack.i.h.bf16 %v843_v14  ;;  %v844_v17 = vunpack.i.l.bf16 %v843_v14 }
 0x177   : > { %v602_v8 = vadd.f32 %v779_v62, %v593_v4 }
 0x178   : > { %v620_v10 = vrot.slane %v603_v7, 7 }
 0x179   : > { %v604_v9 = vmax.f32 %v602_v8, 0.0  ;;  %v613_v22 = vpop.permute.xlu0 %612 }
 0x17b   : > { %v621_v11 = vrot.slane %v604_v9, 7 }
 0x17d   : > { %v622_v12 = vsel %vm619_vm6, %v620_v10, %v621_v11 }
 0x17e   : > { %v846_v13 = vpack.i.bf16 %v622_v12, %v620_v10 }
 0x180   : > { %847 = vrot.lane.b32.xlu1 %v846_v13, %s886_s27 }
 0x184   : > { %627 = vrot.lane.b32.xlu1 %v621_v11, %s886_s27 }
 0x1f2   : > { %v848_v15 = vpop.permute.xlu1 %847 }
 0x1f3   : > { %v850_v18 = vunpack.i.h.bf16 %v848_v15  ;;  %v849_v19 = vunpack.i.l.bf16 %v848_v15 }
 0x1f5   : > { %v633_v20 = vsel %vm632_vm7, %v844_v17, %v849_v19  ;;  %v634_v21 = vsel %vm632_vm7, %v845_v16, %v850_v18 }
 0x1f6   : > { %v628_v23 = vpop.permute.xlu1 %627  ;;  %v786_v24 = vpack.c.bf16 %v633_v20, %v633_v20  ;;  %v787_v25 = vpack.c.bf16 %v634_v21, %v634_v21 }
 0x1f7   : > { %v635_v26 = vsel %vm632_vm7, %v613_v22, %v628_v23 }
 0x1f8   : > { %v788_v27 = vpack.c.bf16 %v635_v26, %v635_v26  ;;  %v650_v28 = vshrl.u32 %v786_v24, 16  ;;  %v653_v29 = vshll.u32 %v786_v24, 16  ;;  %v659_v30 = vshll.u32 %v787_v25, 16 }
 0x1f9   : > { %v663_v31 = vshrl.u32 %v787_v25, 16 }
 0x1fa   : > { %v652_v32 = vrot.slane %v650_v28, 4  ;;  %v655_v33 = vrot.slane %v653_v29, 5  ;;  %v661_v34 = vrot.slane %v659_v30, 5  ;;  %v669_v37 = vshll.u32 %v788_v27, 16 }
 0x1fb   : > { %v665_v36 = vrot.slane %v663_v31, 4 }
 0x1fc   : > { %v656_v40 = vor.u32 %v655_v33, %v652_v32  ;;  %v671_v44 = vrot.slane %v669_v37, 5 }
 0x1fd   : > { %v666_v41 = vor.u32 %v665_v36, %v661_v34 }
 0x1fe   : > { %v657_v42 = vrot.slane %v656_v40, 4 }
 0x1ff   : > { %v667_v43 = vrot.slane %v666_v41, 4 }
 0x200   : > { %v662_v45 = vsel %vm648_vm10, %v657_v42, %v661_v34 }
 0x201   : > { %v672_v46 = vsel %vm648_vm10, %v667_v43, %v671_v44  ;;  %675 = vst [vmem:[%s246_s6] sm:$0xf] %v662_v45 }
 0x202   : > { %676 = vst [vmem:[%s246_s6 + $0x4] sm:$0xf] %v672_v46 }
 0x203 PF: > { %s15_s20 = sadd.s32 1, %s880_s20   ;;  %s1070_s18 = smov %s876_s19 }
 0x204   : > { %p12_p5 = scmp.ge.s32.totalorder %s15_s20, 4   ;;  %s1071_s19 = smov %s1073_s21 }
 0x206   :  { %14 = sbr.rel (!%p12_p5) target bundleno = 2 (0x2), region = 71 }

</bundles_post_ra>
